<compile_context>
chip_gen: v7x
topology: tpu7x:2x2x1
jax: 0.10.0
libtpu: 0.0.40
codegen_flags: <defaults>
</compile_context>

<pallas_src>
import functools

import jax
import jax.numpy as jnp
from jax.experimental import pallas as pl
from jax.experimental.pallas import tpu as pltpu


# ----------------------------------------------------------------------------
# Kernel.  Block layouts (B on lanes, D on sublanes):
#   xs_ref, xt_ref : (D, TB)            -- resident across the inner K axis
#   xneg_ref       : (TK, D, TB)        -- dominant HBM stream, one slab/step
#   ypos_ref       : (1, TB)
#   ytgt_ref       : (TK, 2, TB)        -- merged [y_neg_st; y_neg_tt] targets
#   out_ref        : (1, 8, 128)        -- per-B-tile packed partial sums
# Scratch: six (1, TB) f32 per-lane accumulators.
# ----------------------------------------------------------------------------
def nsloss_kernel(xs_ref, xt_ref, xneg_ref, ypos_ref, ytgt_ref, out_ref,
                  s_yh, s_yh2, s_yp, s_yp2, s_st, s_tt, *, tk):
    ki = pl.program_id(1)               # inner K-reduction axis
    nk = pl.num_programs(1)

    @pl.when(ki == 0)
    def _init():
        for r in (s_yh, s_yh2, s_yp, s_yp2, s_st, s_tt):
            r[...] = jnp.zeros_like(r)

    # Loads upcast to f32 so bf16 inputs (halved HBM bytes) accumulate in f32.
    xs = xs_ref[...].astype(jnp.float32)       # (D, TB)
    xt = xt_ref[...].astype(jnp.float32)       # (D, TB)
    tb = xs.shape[1]

    # ---- positive-pair statistics: once per B tile (ki == 0) ---------------
    @pl.when(ki == 0)
    def _pos_stats():
        y_hat = jnp.sum(xs * xt, axis=0, keepdims=True)      # (1, TB)
        y_pos = ypos_ref[...].astype(jnp.float32)             # (1, TB)
        s_yh[...] += y_hat
        s_yh2[...] += y_hat * y_hat
        s_yp[...] += y_pos
        s_yp2[...] += y_pos * y_pos

    # ---- negative-pair terms: TK groups from the same resident slab --------
    # xs / xt are read from VMEM once per grid step and reused for all groups.
    # TODO(synk): on v7x with bf16 inputs, push the D (sublane) reduce to the
    # idle MXU (ones(1,D) matmul) / XLU to stay on the HBM roofline.
    st_upd = jnp.zeros((1, tb), jnp.float32)
    tt_upd = jnp.zeros((1, tb), jnp.float32)
    for k in range(tk):                                   # static unroll (tk <= 32)
        xn = xneg_ref[k].astype(jnp.float32)              # (D, TB)  zero-cost view
        tgt = ytgt_ref[k].astype(jnp.float32)             # (2, TB)
        d_st = jnp.sum(xs * xn, axis=0, keepdims=True) - tgt[0:1, :]
        d_tt = jnp.sum(xt * xn, axis=0, keepdims=True) - tgt[1:2, :]
        st_upd = st_upd + d_st * d_st
        tt_upd = tt_upd + d_tt * d_tt
    s_st[...] += st_upd
    s_tt[...] += tt_upd

    # ---- finalize this B tile: cross-lane reduce only here -----------------
    @pl.when(ki == nk - 1)
    def _finalize():
        lane = jax.lax.broadcasted_iota(jnp.int32, (1, 8, 128), dimension=2)

        def put(i, r):
            return jnp.where(lane == i, jnp.sum(r[...]), 0.0)

        out_ref[...] = (put(0, s_yh) + put(1, s_yh2) + put(2, s_yp)
                        + put(3, s_yp2) + put(4, s_st) + put(5, s_tt))


# ----------------------------------------------------------------------------
# Wrapper: lane-dense inputs in, scalar loss out.
#   x_s_ld, x_t_ld : (D, B)      (may be bf16)
#   x_neg_ld       : (K, D, B)   (may be bf16)
#   y_pos          : (B,)        y_neg_st, y_neg_tt : (K, B)   (kept f32)
# ----------------------------------------------------------------------------
def nsloss_pallas(x_s_ld, x_t_ld, x_neg_ld, y_pos, y_neg_st, y_neg_tt):
    D, B = x_s_ld.shape
    K, d2, b2 = x_neg_ld.shape
    assert (d2, b2) == (D, B) and K >= 1

    # Generation-aware VMEM budget (v5e/v6e: ~96 MiB, v7x: ~48 MiB).
    try:
        vmem_cap = int(getattr(pltpu.get_tpu_info(), "vmem_capacity_bytes",
                               64 * 1024 * 1024))
    except Exception:
        vmem_cap = 64 * 1024 * 1024
    vmem_limit = max(min(vmem_cap * 3 // 4, 100 * 1024 * 1024), 32 * 1024 * 1024)

    itemsize = jnp.dtype(x_neg_ld.dtype).itemsize

    # Pad B to a lane-dense multiple of 128 (padded columns are zero, so they
    # contribute exactly 0 to every accumulated sum; true B/K scale below).
    # TODO(synk): at production sizes do the gather directly into the padded
    # width (zero row appended to the embedding table) so this pad is free.
    Bpad = ((B + 127) // 128) * 128

    def pad_lanes(a):
        p = Bpad - a.shape[-1]
        if p == 0:
            return a
        return jnp.pad(a, [(0, 0)] * (a.ndim - 1) + [(0, p)])

    xs_p = pad_lanes(x_s_ld)                               # (D, Bpad)
    xt_p = pad_lanes(x_t_ld)                               # (D, Bpad)
    xn_p = pad_lanes(x_neg_ld)                             # (K, D, Bpad)
    yp_p = pad_lanes(y_pos.astype(jnp.float32).reshape(1, B))          # (1, Bpad)
    ytgt = pad_lanes(jnp.stack([y_neg_st.astype(jnp.float32),
                                y_neg_tt.astype(jnp.float32)], axis=1))  # (K, 2, Bpad)

    # Tile selection: lane-dense TB, then TK sized so an x_neg buffer is
    # MiB-scale (amortizes the ~0.35 us per-grid-step overhead).
    TB = 128
    for cand in (1024, 512, 256, 128):
        if Bpad % cand == 0 and D * cand * itemsize * 8 <= vmem_limit:
            TB = cand
            break
    per_group = D * TB * itemsize
    tgt_bytes = max(vmem_limit // 24, 512 * 1024)
    tk_cap = int(max(1, min(K, 32, tgt_bytes // per_group)))
    TK = 1
    for t in range(tk_cap, 0, -1):
        if K % t == 0:
            TK = t
            break
    nb = Bpad // TB
    nk = K // TK

    kernel = functools.partial(nsloss_kernel, tk=TK)

    partials = pl.pallas_call(
        kernel,
        out_shape=jax.ShapeDtypeStruct((nb, 8, 128), jnp.float32),
        grid_spec=pltpu.PrefetchScalarGridSpec(
            num_scalar_prefetch=0,
            grid=(nb, nk),
            in_specs=[
                pl.BlockSpec((D, TB), lambda bi, ki: (0, bi)),          # x_s (resident over ki)
                pl.BlockSpec((D, TB), lambda bi, ki: (0, bi)),          # x_t (resident over ki)
                pl.BlockSpec((TK, D, TB), lambda bi, ki: (ki, 0, bi)),  # x_neg stream
                pl.BlockSpec((1, TB), lambda bi, ki: (0, bi)),          # y_pos
                pl.BlockSpec((TK, 2, TB), lambda bi, ki: (ki, 0, bi)),  # merged targets
            ],
            out_specs=pl.BlockSpec((1, 8, 128), lambda bi, ki: (bi, 0, 0)),
            scratch_shapes=[pltpu.VMEM((1, TB), jnp.float32)] * 6,
        ),
        compiler_params=pltpu.CompilerParams(
            # B tiles are independent (per-tile partial outputs) -> parallel
            # (uses both v7x TensorCores); K is the sequential reduction axis.
            dimension_semantics=("parallel", "arbitrary"),
            vmem_limit_bytes=vmem_limit,
        ),
    )(xs_p, xt_p, xn_p, yp_p, ytgt)

    # Tiny epilogue: combine per-tile partials and apply the closed forms.
    sums = jnp.sum(partials[:, 0, :], axis=0)              # (128,)
    s_yh, s_yh2, s_yp, s_yp2, s_st, s_tt = (sums[0], sums[1], sums[2],
                                            sums[3], sums[4], sums[5])
    fb = float(B)
    fk = float(K)
    # PyTorch quirk preserved: nn.MSELoss((B,1),(B,)) broadcasts to (B,B).
    loss_pos = (fb * s_yh2 - 2.0 * s_yh * s_yp + fb * s_yp2) / (fb * fb)
    loss_neg = (s_st + s_tt) / (fk * fb)
    return (loss_pos + loss_neg) / fb


# ----------------------------------------------------------------------------
# Pure-JAX reference (mirrors the PyTorch forward exactly) for verification.
# ----------------------------------------------------------------------------
def nsloss_ref(x_s, x_t, x_neg, y_pos_vec, y_neg_st_flat, y_neg_tt_flat):
    B = x_s.shape[0]
    y_hat = jnp.sum(x_s * x_t, axis=1, keepdims=True)                  # (B, 1)
    loss_pos = jnp.mean((y_hat - y_pos_vec) ** 2)                      # broadcast (B,B)
    y_hat_st = jnp.sum(x_s[None, :, :] * x_neg, axis=-1).reshape(-1)   # (K*B,)
    loss_st = jnp.mean((y_hat_st - y_neg_st_flat) ** 2)
    y_hat_tt = jnp.sum(x_t[None, :, :] * x_neg, axis=-1).reshape(-1)
    loss_tt = jnp.mean((y_hat_tt - y_neg_tt_flat) ** 2)
    return (loss_pos + loss_st + loss_tt) / B


if __name__ == "__main__":
    # Small, deterministic synthetic setup consistent with NSLoss usage.
    N = 16   # nodes per embedding table
    D = 32   # embedding dim
    B = 8    # batch size (len(idx_s) == len(idx_t))
    K = 4    # neg_num

    key = jax.random.PRNGKey(0)
    k_es, k_et, k_is, k_it, k_adj, k_adjt, k_neg = jax.random.split(key, 7)

    embed_s = jax.random.normal(k_es, (N, D), dtype=jnp.float32)
    embed_t = jax.random.normal(k_et, (N, D), dtype=jnp.float32)
    idx_s = jax.random.randint(k_is, (B,), 0, N)
    idx_t = jax.random.randint(k_it, (B,), 0, N)
    adj_mat = jax.random.uniform(k_adj, (N, N), dtype=jnp.float32)
    adj_t = jax.random.uniform(k_adjt, (N, N), dtype=jnp.float32)

    # Negative sampling ('neg' way): uniform indices into embed_t, shape (K, B).
    # TODO(synk): torch's stateful .uniform_() RNG replaced by deterministic jax.random draw.
    idx_neg = jax.random.randint(k_neg, (K, B), 0, N)

    # ---- get_xy equivalent: gather directly into lane-dense layouts ---------
    # (table-sized transpose only; the big (K,D,B) stream is materialized once
    #  by the gather itself, never re-transposed.)
    embed_s_T = embed_s.T                                    # (D, N)
    embed_t_T = embed_t.T                                    # (D, N)
    x_s_ld = embed_s_T[:, idx_s]                             # (D, B)
    x_t_ld = embed_t_T[:, idx_t]                             # (D, B)
    x_neg_ld = jax.vmap(lambda ids: embed_t_T[:, ids])(idx_neg)   # (K, D, B)
    y_pos = adj_mat[idx_s, idx_t]                            # (B,)
    y_neg_st = adj_mat[idx_s[None, :], idx_neg]              # (K, B)
    y_neg_tt = adj_t[idx_t[None, :], idx_neg]                # (K, B)

    # f32 run: must match the PyTorch-equivalent reference tightly.
    loss = nsloss_pallas(x_s_ld, x_t_ld, x_neg_ld, y_pos, y_neg_st, y_neg_tt)
    loss = jax.block_until_ready(loss)

    x_s = embed_s[idx_s]
    x_t = embed_t[idx_t]
    x_neg = embed_t[idx_neg]
    ref = nsloss_ref(x_s, x_t, x_neg, y_pos,
                     y_neg_st.reshape(-1), y_neg_tt.reshape(-1))
    ref = jax.block_until_ready(ref)
    assert jnp.allclose(loss, ref, rtol=1e-4, atol=1e-5), (loss, ref)

    # bf16 embeddings (halves HBM bytes on the dominant stream; f32 accum,
    # f32 targets) — loose-tolerance check.
    loss_bf16 = nsloss_pallas(x_s_ld.astype(jnp.bfloat16),
                              x_t_ld.astype(jnp.bfloat16),
                              x_neg_ld.astype(jnp.bfloat16),
                              y_pos, y_neg_st, y_neg_tt)
    loss_bf16 = jax.block_until_ready(loss_bf16)
    assert jnp.allclose(loss_bf16, ref, rtol=5e-2, atol=1e-2), (loss_bf16, ref)

    print("KERNEL_OK")
</pallas_src>

<mosaic_0001>
module attributes {stable_mosaic.version = 11 : i64} {
  func.func @nsloss_kernel(%arg0: i32, %arg1: i32, %arg2: memref<32x128xf32, #tpu.memory_space<vmem>>, %arg3: memref<32x128xf32, #tpu.memory_space<vmem>>, %arg4: memref<4x32x128xf32, #tpu.memory_space<vmem>>, %arg5: memref<1x128xf32, #tpu.memory_space<vmem>>, %arg6: memref<4x2x128xf32, #tpu.memory_space<vmem>>, %arg7: memref<1x8x128xf32, #tpu.memory_space<vmem>>, %arg8: memref<1x128xf32, #tpu.memory_space<vmem>>, %arg9: memref<1x128xf32, #tpu.memory_space<vmem>>, %arg10: memref<1x128xf32, #tpu.memory_space<vmem>>, %arg11: memref<1x128xf32, #tpu.memory_space<vmem>>, %arg12: memref<1x128xf32, #tpu.memory_space<vmem>>, %arg13: memref<1x128xf32, #tpu.memory_space<vmem>>) attributes {dimension_semantics = [#tpu.dimension_semantics<parallel>, #tpu.dimension_semantics<arbitrary>], iteration_bounds = array<i64: 1, 1>, scalar_prefetch = 0 : i64, scratch_operands = 6 : i64, tpu.core_type = #tpu.core_type<tc>, window_params = [{transform_indices = @transform_0, window_bounds = array<i64: 32, 128>}, {transform_indices = @transform_1, window_bounds = array<i64: 32, 128>}, {transform_indices = @transform_2, window_bounds = array<i64: 4, 32, 128>}, {transform_indices = @transform_3, window_bounds = array<i64: 1, 128>}, {transform_indices = @transform_4, window_bounds = array<i64: 4, 2, 128>}, {transform_indices = @transform_5, window_bounds = array<i64: 1, 8, 128>}]} {
    %c0_i32 = arith.constant 0 : i32
    %0 = arith.cmpi eq, %arg1, %c0_i32 : i32
    %1 = arith.extui %0 : i1 to i32
    %c0_i32_0 = arith.constant 0 : i32
    %2 = arith.cmpi ne, %1, %c0_i32_0 : i32
    scf.if %2 {
      %cst_46 = arith.constant 0.000000e+00 : f32
      %91 = vector.broadcast %cst_46 : f32 to vector<1x128xf32>
      %c0_47 = arith.constant 0 : index
      %c0_48 = arith.constant 0 : index
      %92 = vector.load %arg8[%c0_47, %c0_48] : memref<1x128xf32, #tpu.memory_space<vmem>>, vector<1x128xf32>
      tpu.vector_store %arg8[%c0_47, %c0_48], %91 {strides = array<i32>} : memref<1x128xf32, #tpu.memory_space<vmem>>, vector<1x128xf32>,
      %cst_49 = arith.constant 0.000000e+00 : f32
      %93 = vector.broadcast %cst_49 : f32 to vector<1x128xf32>
      %c0_50 = arith.constant 0 : index
      %c0_51 = arith.constant 0 : index
      %94 = vector.load %arg9[%c0_50, %c0_51] : memref<1x128xf32, #tpu.memory_space<vmem>>, vector<1x128xf32>
      tpu.vector_store %arg9[%c0_50, %c0_51], %93 {strides = array<i32>} : memref<1x128xf32, #tpu.memory_space<vmem>>, vector<1x128xf32>,
      %cst_52 = arith.constant 0.000000e+00 : f32
      %95 = vector.broadcast %cst_52 : f32 to vector<1x128xf32>
      %c0_53 = arith.constant 0 : index
      %c0_54 = arith.constant 0 : index
      %96 = vector.load %arg10[%c0_53, %c0_54] : memref<1x128xf32, #tpu.memory_space<vmem>>, vector<1x128xf32>
      tpu.vector_store %arg10[%c0_53, %c0_54], %95 {strides = array<i32>} : memref<1x128xf32, #tpu.memory_space<vmem>>, vector<1x128xf32>,
      %cst_55 = arith.constant 0.000000e+00 : f32
      %97 = vector.broadcast %cst_55 : f32 to vector<1x128xf32>
      %c0_56 = arith.constant 0 : index
      %c0_57 = arith.constant 0 : index
      %98 = vector.load %arg11[%c0_56, %c0_57] : memref<1x128xf32, #tpu.memory_space<vmem>>, vector<1x128xf32>
      tpu.vector_store %arg11[%c0_56, %c0_57], %97 {strides = array<i32>} : memref<1x128xf32, #tpu.memory_space<vmem>>, vector<1x128xf32>,
      %cst_58 = arith.constant 0.000000e+00 : f32
      %99 = vector.broadcast %cst_58 : f32 to vector<1x128xf32>
      %c0_59 = arith.constant 0 : index
      %c0_60 = arith.constant 0 : index
      %100 = vector.load %arg12[%c0_59, %c0_60] : memref<1x128xf32, #tpu.memory_space<vmem>>, vector<1x128xf32>
      tpu.vector_store %arg12[%c0_59, %c0_60], %99 {strides = array<i32>} : memref<1x128xf32, #tpu.memory_space<vmem>>, vector<1x128xf32>,
      %cst_61 = arith.constant 0.000000e+00 : f32
      %101 = vector.broadcast %cst_61 : f32 to vector<1x128xf32>
      %c0_62 = arith.constant 0 : index
      %c0_63 = arith.constant 0 : index
      %102 = vector.load %arg13[%c0_62, %c0_63] : memref<1x128xf32, #tpu.memory_space<vmem>>, vector<1x128xf32>
      tpu.vector_store %arg13[%c0_62, %c0_63], %101 {strides = array<i32>} : memref<1x128xf32, #tpu.memory_space<vmem>>, vector<1x128xf32>,
    } else {
    }
    %c0 = arith.constant 0 : index
    %c0_1 = arith.constant 0 : index
    %3 = vector.load %arg2[%c0, %c0_1] : memref<32x128xf32, #tpu.memory_space<vmem>>, vector<32x128xf32>
    %c0_2 = arith.constant 0 : index
    %c0_3 = arith.constant 0 : index
    %4 = vector.load %arg3[%c0_2, %c0_3] : memref<32x128xf32, #tpu.memory_space<vmem>>, vector<32x128xf32>
    %c0_i32_4 = arith.constant 0 : i32
    %5 = arith.cmpi eq, %arg1, %c0_i32_4 : i32
    %6 = arith.extui %5 : i1 to i32
    %c0_i32_5 = arith.constant 0 : i32
    %7 = arith.cmpi ne, %6, %c0_i32_5 : i32
    scf.if %7 {
      %91 = arith.mulf %3, %4 : vector<32x128xf32>
      %cst_46 = arith.constant dense<0.000000e+00> : vector<128xf32>
      %92 = vector.multi_reduction <add>, %91, %cst_46 [0] : vector<32x128xf32> to vector<128xf32>
      %93 = vector.shape_cast %92 : vector<128xf32> to vector<1x128xf32>
      %c0_47 = arith.constant 0 : index
      %c0_48 = arith.constant 0 : index
      %94 = vector.load %arg5[%c0_47, %c0_48] : memref<1x128xf32, #tpu.memory_space<vmem>>, vector<1x128xf32>
      %c0_49 = arith.constant 0 : index
      %c0_50 = arith.constant 0 : index
      %95 = vector.load %arg8[%c0_49, %c0_50] : memref<1x128xf32, #tpu.memory_space<vmem>>, vector<1x128xf32>
      %96 = arith.addf %95, %93 : vector<1x128xf32>
      %c0_51 = arith.constant 0 : index
      %c0_52 = arith.constant 0 : index
      %97 = vector.load %arg8[%c0_51, %c0_52] : memref<1x128xf32, #tpu.memory_space<vmem>>, vector<1x128xf32>
      tpu.vector_store %arg8[%c0_51, %c0_52], %96 {strides = array<i32>} : memref<1x128xf32, #tpu.memory_space<vmem>>, vector<1x128xf32>,
      %c0_53 = arith.constant 0 : index
      %c0_54 = arith.constant 0 : index
      %98 = vector.load %arg9[%c0_53, %c0_54] : memref<1x128xf32, #tpu.memory_space<vmem>>, vector<1x128xf32>
      %99 = arith.mulf %93, %93 : vector<1x128xf32>
      %100 = arith.addf %98, %99 : vector<1x128xf32>
      %c0_55 = arith.constant 0 : index
      %c0_56 = arith.constant 0 : index
      %101 = vector.load %arg9[%c0_55, %c0_56] : memref<1x128xf32, #tpu.memory_space<vmem>>, vector<1x128xf32>
      tpu.vector_store %arg9[%c0_55, %c0_56], %100 {strides = array<i32>} : memref<1x128xf32, #tpu.memory_space<vmem>>, vector<1x128xf32>,
      %c0_57 = arith.constant 0 : index
      %c0_58 = arith.constant 0 : index
      %102 = vector.load %arg10[%c0_57, %c0_58] : memref<1x128xf32, #tpu.memory_space<vmem>>, vector<1x128xf32>
      %103 = arith.addf %102, %94 : vector<1x128xf32>
      %c0_59 = arith.constant 0 : index
      %c0_60 = arith.constant 0 : index
      %104 = vector.load %arg10[%c0_59, %c0_60] : memref<1x128xf32, #tpu.memory_space<vmem>>, vector<1x128xf32>
      tpu.vector_store %arg10[%c0_59, %c0_60], %103 {strides = array<i32>} : memref<1x128xf32, #tpu.memory_space<vmem>>, vector<1x128xf32>,
      %c0_61 = arith.constant 0 : index
      %c0_62 = arith.constant 0 : index
      %105 = vector.load %arg11[%c0_61, %c0_62] : memref<1x128xf32, #tpu.memory_space<vmem>>, vector<1x128xf32>
      %106 = arith.mulf %94, %94 : vector<1x128xf32>
      %107 = arith.addf %105, %106 : vector<1x128xf32>
      %c0_63 = arith.constant 0 : index
      %c0_64 = arith.constant 0 : index
      %108 = vector.load %arg11[%c0_63, %c0_64] : memref<1x128xf32, #tpu.memory_space<vmem>>, vector<1x128xf32>
      tpu.vector_store %arg11[%c0_63, %c0_64], %107 {strides = array<i32>} : memref<1x128xf32, #tpu.memory_space<vmem>>, vector<1x128xf32>,
    } else {
    }
    %cst = arith.constant 0.000000e+00 : f32
    %8 = vector.broadcast %cst : f32 to vector<1x128xf32>
    %cst_6 = arith.constant 0.000000e+00 : f32
    %9 = vector.broadcast %cst_6 : f32 to vector<1x128xf32>
    %c0_7 = arith.constant 0 : index
    %c0_8 = arith.constant 0 : index
    %c0_9 = arith.constant 0 : index
    %10 = vector.load %arg4[%c0_7, %c0_8, %c0_9] : memref<4x32x128xf32, #tpu.memory_space<vmem>>, vector<1x32x128xf32>
    %11 = vector.shape_cast %10 : vector<1x32x128xf32> to vector<32x128xf32>
    %c0_10 = arith.constant 0 : index
    %c0_11 = arith.constant 0 : index
    %c0_12 = arith.constant 0 : index
    %12 = vector.load %arg6[%c0_10, %c0_11, %c0_12] : memref<4x2x128xf32, #tpu.memory_space<vmem>>, vector<1x2x128xf32>
    %13 = vector.shape_cast %12 : vector<1x2x128xf32> to vector<2x128xf32>
    %14 = arith.mulf %3, %11 : vector<32x128xf32>
    %cst_13 = arith.constant dense<0.000000e+00> : vector<128xf32>
    %15 = vector.multi_reduction <add>, %14, %cst_13 [0] : vector<32x128xf32> to vector<128xf32>
    %16 = vector.shape_cast %15 : vector<128xf32> to vector<1x128xf32>
    %17 = vector.extract_strided_slice %13 {offsets = [0, 0], sizes = [1, 128], strides = [1, 1]} : vector<2x128xf32> to vector<1x128xf32>
    %18 = arith.subf %16, %17 : vector<1x128xf32>
    %19 = arith.mulf %4, %11 : vector<32x128xf32>
    %cst_14 = arith.constant dense<0.000000e+00> : vector<128xf32>
    %20 = vector.multi_reduction <add>, %19, %cst_14 [0] : vector<32x128xf32> to vector<128xf32>
    %21 = vector.shape_cast %20 : vector<128xf32> to vector<1x128xf32>
    %22 = vector.extract_strided_slice %13 {offsets = [1, 0], sizes = [1, 128], strides = [1, 1]} : vector<2x128xf32> to vector<1x128xf32>
    %23 = arith.subf %21, %22 : vector<1x128xf32>
    %24 = arith.mulf %18, %18 : vector<1x128xf32>
    %25 = arith.addf %8, %24 : vector<1x128xf32>
    %26 = arith.mulf %23, %23 : vector<1x128xf32>
    %27 = arith.addf %9, %26 : vector<1x128xf32>
    %c1 = arith.constant 1 : index
    %c0_15 = arith.constant 0 : index
    %c0_16 = arith.constant 0 : index
    %28 = vector.load %arg4[%c1, %c0_15, %c0_16] : memref<4x32x128xf32, #tpu.memory_space<vmem>>, vector<1x32x128xf32>
    %29 = vector.shape_cast %28 : vector<1x32x128xf32> to vector<32x128xf32>
    %c1_17 = arith.constant 1 : index
    %c0_18 = arith.constant 0 : index
    %c0_19 = arith.constant 0 : index
    %30 = vector.load %arg6[%c1_17, %c0_18, %c0_19] : memref<4x2x128xf32, #tpu.memory_space<vmem>>, vector<1x2x128xf32>
    %31 = vector.shape_cast %30 : vector<1x2x128xf32> to vector<2x128xf32>
    %32 = arith.mulf %3, %29 : vector<32x128xf32>
    %cst_20 = arith.constant dense<0.000000e+00> : vector<128xf32>
    %33 = vector.multi_reduction <add>, %32, %cst_20 [0] : vector<32x128xf32> to vector<128xf32>
    %34 = vector.shape_cast %33 : vector<128xf32> to vector<1x128xf32>
    %35 = vector.extract_strided_slice %31 {offsets = [0, 0], sizes = [1, 128], strides = [1, 1]} : vector<2x128xf32> to vector<1x128xf32>
    %36 = arith.subf %34, %35 : vector<1x128xf32>
    %37 = arith.mulf %4, %29 : vector<32x128xf32>
    %cst_21 = arith.constant dense<0.000000e+00> : vector<128xf32>
    %38 = vector.multi_reduction <add>, %37, %cst_21 [0] : vector<32x128xf32> to vector<128xf32>
    %39 = vector.shape_cast %38 : vector<128xf32> to vector<1x128xf32>
    %40 = vector.extract_strided_slice %31 {offsets = [1, 0], sizes = [1, 128], strides = [1, 1]} : vector<2x128xf32> to vector<1x128xf32>
    %41 = arith.subf %39, %40 : vector<1x128xf32>
    %42 = arith.mulf %36, %36 : vector<1x128xf32>
    %43 = arith.addf %25, %42 : vector<1x128xf32>
    %44 = arith.mulf %41, %41 : vector<1x128xf32>
    %45 = arith.addf %27, %44 : vector<1x128xf32>
    %c2 = arith.constant 2 : index
    %c0_22 = arith.constant 0 : index
    %c0_23 = arith.constant 0 : index
    %46 = vector.load %arg4[%c2, %c0_22, %c0_23] : memref<4x32x128xf32, #tpu.memory_space<vmem>>, vector<1x32x128xf32>
    %47 = vector.shape_cast %46 : vector<1x32x128xf32> to vector<32x128xf32>
    %c2_24 = arith.constant 2 : index
    %c0_25 = arith.constant 0 : index
    %c0_26 = arith.constant 0 : index
    %48 = vector.load %arg6[%c2_24, %c0_25, %c0_26] : memref<4x2x128xf32, #tpu.memory_space<vmem>>, vector<1x2x128xf32>
    %49 = vector.shape_cast %48 : vector<1x2x128xf32> to vector<2x128xf32>
    %50 = arith.mulf %3, %47 : vector<32x128xf32>
    %cst_27 = arith.constant dense<0.000000e+00> : vector<128xf32>
    %51 = vector.multi_reduction <add>, %50, %cst_27 [0] : vector<32x128xf32> to vector<128xf32>
    %52 = vector.shape_cast %51 : vector<128xf32> to vector<1x128xf32>
    %53 = vector.extract_strided_slice %49 {offsets = [0, 0], sizes = [1, 128], strides = [1, 1]} : vector<2x128xf32> to vector<1x128xf32>
    %54 = arith.subf %52, %53 : vector<1x128xf32>
    %55 = arith.mulf %4, %47 : vector<32x128xf32>
    %cst_28 = arith.constant dense<0.000000e+00> : vector<128xf32>
    %56 = vector.multi_reduction <add>, %55, %cst_28 [0] : vector<32x128xf32> to vector<128xf32>
    %57 = vector.shape_cast %56 : vector<128xf32> to vector<1x128xf32>
    %58 = vector.extract_strided_slice %49 {offsets = [1, 0], sizes = [1, 128], strides = [1, 1]} : vector<2x128xf32> to vector<1x128xf32>
    %59 = arith.subf %57, %58 : vector<1x128xf32>
    %60 = arith.mulf %54, %54 : vector<1x128xf32>
    %61 = arith.addf %43, %60 : vector<1x128xf32>
    %62 = arith.mulf %59, %59 : vector<1x128xf32>
    %63 = arith.addf %45, %62 : vector<1x128xf32>
    %c3 = arith.constant 3 : index
    %c0_29 = arith.constant 0 : index
    %c0_30 = arith.constant 0 : index
    %64 = vector.load %arg4[%c3, %c0_29, %c0_30] : memref<4x32x128xf32, #tpu.memory_space<vmem>>, vector<1x32x128xf32>
    %65 = vector.shape_cast %64 : vector<1x32x128xf32> to vector<32x128xf32>
    %c3_31 = arith.constant 3 : index
    %c0_32 = arith.constant 0 : index
    %c0_33 = arith.constant 0 : index
    %66 = vector.load %arg6[%c3_31, %c0_32, %c0_33] : memref<4x2x128xf32, #tpu.memory_space<vmem>>, vector<1x2x128xf32>
    %67 = vector.shape_cast %66 : vector<1x2x128xf32> to vector<2x128xf32>
    %68 = arith.mulf %3, %65 : vector<32x128xf32>
    %cst_34 = arith.constant dense<0.000000e+00> : vector<128xf32>
    %69 = vector.multi_reduction <add>, %68, %cst_34 [0] : vector<32x128xf32> to vector<128xf32>
    %70 = vector.shape_cast %69 : vector<128xf32> to vector<1x128xf32>
    %71 = vector.extract_strided_slice %67 {offsets = [0, 0], sizes = [1, 128], strides = [1, 1]} : vector<2x128xf32> to vector<1x128xf32>
    %72 = arith.subf %70, %71 : vector<1x128xf32>
    %73 = arith.mulf %4, %65 : vector<32x128xf32>
    %cst_35 = arith.constant dense<0.000000e+00> : vector<128xf32>
    %74 = vector.multi_reduction <add>, %73, %cst_35 [0] : vector<32x128xf32> to vector<128xf32>
    %75 = vector.shape_cast %74 : vector<128xf32> to vector<1x128xf32>
    %76 = vector.extract_strided_slice %67 {offsets = [1, 0], sizes = [1, 128], strides = [1, 1]} : vector<2x128xf32> to vector<1x128xf32>
    %77 = arith.subf %75, %76 : vector<1x128xf32>
    %78 = arith.mulf %72, %72 : vector<1x128xf32>
    %79 = arith.addf %61, %78 : vector<1x128xf32>
    %80 = arith.mulf %77, %77 : vector<1x128xf32>
    %81 = arith.addf %63, %80 : vector<1x128xf32>
    %c0_36 = arith.constant 0 : index
    %c0_37 = arith.constant 0 : index
    %82 = vector.load %arg12[%c0_36, %c0_37] : memref<1x128xf32, #tpu.memory_space<vmem>>, vector<1x128xf32>
    %83 = arith.addf %82, %79 : vector<1x128xf32>
    %c0_38 = arith.constant 0 : index
    %c0_39 = arith.constant 0 : index
    %84 = vector.load %arg12[%c0_38, %c0_39] : memref<1x128xf32, #tpu.memory_space<vmem>>, vector<1x128xf32>
    tpu.vector_store %arg12[%c0_38, %c0_39], %83 {strides = array<i32>} : memref<1x128xf32, #tpu.memory_space<vmem>>, vector<1x128xf32>,
    %c0_40 = arith.constant 0 : index
    %c0_41 = arith.constant 0 : index
    %85 = vector.load %arg13[%c0_40, %c0_41] : memref<1x128xf32, #tpu.memory_space<vmem>>, vector<1x128xf32>
    %86 = arith.addf %85, %81 : vector<1x128xf32>
    %c0_42 = arith.constant 0 : index
    %c0_43 = arith.constant 0 : index
    %87 = vector.load %arg13[%c0_42, %c0_43] : memref<1x128xf32, #tpu.memory_space<vmem>>, vector<1x128xf32>
    tpu.vector_store %arg13[%c0_42, %c0_43], %86 {strides = array<i32>} : memref<1x128xf32, #tpu.memory_space<vmem>>, vector<1x128xf32>,
    %c0_i32_44 = arith.constant 0 : i32
    %88 = arith.cmpi eq, %arg1, %c0_i32_44 : i32
    %89 = arith.extui %88 : i1 to i32
    %c0_i32_45 = arith.constant 0 : i32
    %90 = arith.cmpi ne, %89, %c0_i32_45 : i32
    scf.if %90 {
      %91 = tpu.iota {dimensions = array<i32: 2>} : vector<1x8x128xi32>
      %c0_i32_46 = arith.constant 0 : i32
      %92 = vector.broadcast %c0_i32_46 : i32 to vector<1x8x128xi32>
      %93 = arith.cmpi eq, %91, %92 : vector<1x8x128xi32>
      %c0_47 = arith.constant 0 : index
      %c0_48 = arith.constant 0 : index
      %94 = vector.load %arg8[%c0_47, %c0_48] : memref<1x128xf32, #tpu.memory_space<vmem>>, vector<1x128xf32>
      %95 = vector.shape_cast %94 : vector<1x128xf32> to vector<1x1x128xf32>
      %cst_49 = arith.constant dense<0.000000e+00> : vector<1xf32>
      %96 = vector.multi_reduction <add>, %95, %cst_49 [1, 2] : vector<1x1x128xf32> to vector<1xf32>
      %97 = vector.shape_cast %96 : vector<1xf32> to vector<1x1x1xf32>
      %98 = vector.extract %97[0, 0, 0] : f32 from vector<1x1x1xf32>
      %cst_50 = arith.constant 0.000000e+00 : f32
      %99 = vector.broadcast %98 : f32 to vector<1x8x128xf32>
      %100 = vector.broadcast %cst_50 : f32 to vector<1x8x128xf32>
      %101 = arith.select %93, %99, %100 : vector<1x8x128xi1>, vector<1x8x128xf32>
      %c1_i32 = arith.constant 1 : i32
      %102 = vector.broadcast %c1_i32 : i32 to vector<1x8x128xi32>
      %103 = arith.cmpi eq, %91, %102 : vector<1x8x128xi32>
      %c0_51 = arith.constant 0 : index
      %c0_52 = arith.constant 0 : index
      %104 = vector.load %arg9[%c0_51, %c0_52] : memref<1x128xf32, #tpu.memory_space<vmem>>, vector<1x128xf32>
      %105 = vector.shape_cast %104 : vector<1x128xf32> to vector<1x1x128xf32>
      %cst_53 = arith.constant dense<0.000000e+00> : vector<1xf32>
      %106 = vector.multi_reduction <add>, %105, %cst_53 [1, 2] : vector<1x1x128xf32> to vector<1xf32>
      %107 = vector.shape_cast %106 : vector<1xf32> to vector<1x1x1xf32>
      %108 = vector.extract %107[0, 0, 0] : f32 from vector<1x1x1xf32>
      %cst_54 = arith.constant 0.000000e+00 : f32
      %109 = vector.broadcast %108 : f32 to vector<1x8x128xf32>
      %110 = vector.broadcast %cst_54 : f32 to vector<1x8x128xf32>
      %111 = arith.select %103, %109, %110 : vector<1x8x128xi1>, vector<1x8x128xf32>
      %112 = arith.addf %101, %111 : vector<1x8x128xf32>
      %c2_i32 = arith.constant 2 : i32
      %113 = vector.broadcast %c2_i32 : i32 to vector<1x8x128xi32>
      %114 = arith.cmpi eq, %91, %113 : vector<1x8x128xi32>
      %c0_55 = arith.constant 0 : index
      %c0_56 = arith.constant 0 : index
      %115 = vector.load %arg10[%c0_55, %c0_56] : memref<1x128xf32, #tpu.memory_space<vmem>>, vector<1x128xf32>
      %116 = vector.shape_cast %115 : vector<1x128xf32> to vector<1x1x128xf32>
      %cst_57 = arith.constant dense<0.000000e+00> : vector<1xf32>
      %117 = vector.multi_reduction <add>, %116, %cst_57 [1, 2] : vector<1x1x128xf32> to vector<1xf32>
      %118 = vector.shape_cast %117 : vector<1xf32> to vector<1x1x1xf32>
      %119 = vector.extract %118[0, 0, 0] : f32 from vector<1x1x1xf32>
      %cst_58 = arith.constant 0.000000e+00 : f32
      %120 = vector.broadcast %119 : f32 to vector<1x8x128xf32>
      %121 = vector.broadcast %cst_58 : f32 to vector<1x8x128xf32>
      %122 = arith.select %114, %120, %121 : vector<1x8x128xi1>, vector<1x8x128xf32>
      %123 = arith.addf %112, %122 : vector<1x8x128xf32>
      %c3_i32 = arith.constant 3 : i32
      %124 = vector.broadcast %c3_i32 : i32 to vector<1x8x128xi32>
      %125 = arith.cmpi eq, %91, %124 : vector<1x8x128xi32>
      %c0_59 = arith.constant 0 : index
      %c0_60 = arith.constant 0 : index
      %126 = vector.load %arg11[%c0_59, %c0_60] : memref<1x128xf32, #tpu.memory_space<vmem>>, vector<1x128xf32>
      %127 = vector.shape_cast %126 : vector<1x128xf32> to vector<1x1x128xf32>
      %cst_61 = arith.constant dense<0.000000e+00> : vector<1xf32>
      %128 = vector.multi_reduction <add>, %127, %cst_61 [1, 2] : vector<1x1x128xf32> to vector<1xf32>
      %129 = vector.shape_cast %128 : vector<1xf32> to vector<1x1x1xf32>
      %130 = vector.extract %129[0, 0, 0] : f32 from vector<1x1x1xf32>
      %cst_62 = arith.constant 0.000000e+00 : f32
      %131 = vector.broadcast %130 : f32 to vector<1x8x128xf32>
      %132 = vector.broadcast %cst_62 : f32 to vector<1x8x128xf32>
      %133 = arith.select %125, %131, %132 : vector<1x8x128xi1>, vector<1x8x128xf32>
      %134 = arith.addf %123, %133 : vector<1x8x128xf32>
      %c4_i32 = arith.constant 4 : i32
      %135 = vector.broadcast %c4_i32 : i32 to vector<1x8x128xi32>
      %136 = arith.cmpi eq, %91, %135 : vector<1x8x128xi32>
      %c0_63 = arith.constant 0 : index
      %c0_64 = arith.constant 0 : index
      %137 = vector.load %arg12[%c0_63, %c0_64] : memref<1x128xf32, #tpu.memory_space<vmem>>, vector<1x128xf32>
      %138 = vector.shape_cast %137 : vector<1x128xf32> to vector<1x1x128xf32>
      %cst_65 = arith.constant dense<0.000000e+00> : vector<1xf32>
      %139 = vector.multi_reduction <add>, %138, %cst_65 [1, 2] : vector<1x1x128xf32> to vector<1xf32>
      %140 = vector.shape_cast %139 : vector<1xf32> to vector<1x1x1xf32>
      %141 = vector.extract %140[0, 0, 0] : f32 from vector<1x1x1xf32>
      %cst_66 = arith.constant 0.000000e+00 : f32
      %142 = vector.broadcast %141 : f32 to vector<1x8x128xf32>
      %143 = vector.broadcast %cst_66 : f32 to vector<1x8x128xf32>
      %144 = arith.select %136, %142, %143 : vector<1x8x128xi1>, vector<1x8x128xf32>
      %145 = arith.addf %134, %144 : vector<1x8x128xf32>
      %c5_i32 = arith.constant 5 : i32
      %146 = vector.broadcast %c5_i32 : i32 to vector<1x8x128xi32>
      %147 = arith.cmpi eq, %91, %146 : vector<1x8x128xi32>
      %c0_67 = arith.constant 0 : index
      %c0_68 = arith.constant 0 : index
      %148 = vector.load %arg13[%c0_67, %c0_68] : memref<1x128xf32, #tpu.memory_space<vmem>>, vector<1x128xf32>
      %149 = vector.shape_cast %148 : vector<1x128xf32> to vector<1x1x128xf32>
      %cst_69 = arith.constant dense<0.000000e+00> : vector<1xf32>
      %150 = vector.multi_reduction <add>, %149, %cst_69 [1, 2] : vector<1x1x128xf32> to vector<1xf32>
      %151 = vector.shape_cast %150 : vector<1xf32> to vector<1x1x1xf32>
      %152 = vector.extract %151[0, 0, 0] : f32 from vector<1x1x1xf32>
      %cst_70 = arith.constant 0.000000e+00 : f32
      %153 = vector.broadcast %152 : f32 to vector<1x8x128xf32>
      %154 = vector.broadcast %cst_70 : f32 to vector<1x8x128xf32>
      %155 = arith.select %147, %153, %154 : vector<1x8x128xi1>, vector<1x8x128xf32>
      %156 = arith.addf %145, %155 : vector<1x8x128xf32>
      %c0_71 = arith.constant 0 : index
      %c0_72 = arith.constant 0 : index
      %c0_73 = arith.constant 0 : index
      %157 = vector.load %arg7[%c0_71, %c0_72, %c0_73] : memref<1x8x128xf32, #tpu.memory_space<vmem>>, vector<1x8x128xf32>
      tpu.vector_store %arg7[%c0_71, %c0_72, %c0_73], %156 {strides = array<i32>} : memref<1x8x128xf32, #tpu.memory_space<vmem>>, vector<1x8x128xf32>,
    } else {
    }
    return
  }
  func.func @transform_0(%arg0: i32, %arg1: i32) -> (i32, i32) {
    %c0_i32 = arith.constant 0 : i32
    %c0_i32_0 = arith.constant 0 : i32
    return %c0_i32, %arg0 : i32, i32
  }
  func.func @transform_1(%arg0: i32, %arg1: i32) -> (i32, i32) {
    %c0_i32 = arith.constant 0 : i32
    %c0_i32_0 = arith.constant 0 : i32
    return %c0_i32, %arg0 : i32, i32
  }
  func.func @transform_2(%arg0: i32, %arg1: i32) -> (i32, i32, i32) {
    %c0_i32 = arith.constant 0 : i32
    %c0_i32_0 = arith.constant 0 : i32
    return %arg1, %c0_i32, %arg0 : i32, i32, i32
  }
  func.func @transform_3(%arg0: i32, %arg1: i32) -> (i32, i32) {
    %c0_i32 = arith.constant 0 : i32
    %c0_i32_0 = arith.constant 0 : i32
    return %c0_i32, %arg0 : i32, i32
  }
  func.func @transform_4(%arg0: i32, %arg1: i32) -> (i32, i32, i32) {
    %c0_i32 = arith.constant 0 : i32
    %c0_i32_0 = arith.constant 0 : i32
    return %arg1, %c0_i32, %arg0 : i32, i32, i32
  }
  func.func @transform_5(%arg0: i32, %arg1: i32) -> (i32, i32, i32) {
    %c0_i32 = arith.constant 0 : i32
    %c0_i32_0 = arith.constant 0 : i32
    %c0_i32_1 = arith.constant 0 : i32
    return %arg0, %c0_i32, %c0_i32_0 : i32, i32, i32
  }
}

</mosaic_0001>

<bundles_post_ra>
// kernel: tpu_custom_call.1
= control target key start
LH: loop header
LB: loop body
LE: loop exit
PB: predicated region body
PF: predicated region fallthrough
CT: control target
= control target key end

     0   :  { %10 = vsyncpa [#allocation9], 0  ;;  %s698_s0 = inlined_call_operand.hbm [shape: f32[32,128], index: 0, kind: input, shape index: {}]   ;;  %s699_s1 = inlined_call_operand.hbm [shape: f32[32,128], index: 1, kind: input, shape index: {}]   ;;  %s700_s2 = inlined_call_operand.hbm [shape: f32[4,32,128], index: 2, kind: input, shape index: {}]   ;;  %s701_s3 = inlined_call_operand.vmem [shape: f32[1,128], index: 3, kind: input, shape index: {}]   ;;  %s702_s4 = inlined_call_operand.vmem [shape: f32[4,2,128], index: 4, kind: input, shape index: {}]   ;;  %s703_s5 = inlined_call_operand.hbm [shape: f32[1,8,128], index: 5, kind: output, shape index: {}]  }
   0x1   :  { %11 = vsyncpa [#allocation12], 0 }
   0x2   :  { %12 = vsyncpa [#allocation10], 0  ;;  %s517_s18 = smov [#allocation11]   ;;  %s518_s20 = smov [#allocation8]  }
   0x3   :  { %s30_s19 = sshll.u32 %s517_s18, 4  ;;  %s18_s21 = sshll.u32 %s518_s20, 4  ;;  %s31_s19 = int_to_ptr.vmem [resolvable:$true] %s30_s19  ;;  %s555_s21 = int_to_ptr.vmem [resolvable:$true] %s18_s21 }
   0x4   :  { %s423_s24 = scalar_lea.hbm %s699_s1, 512 }
   0x5   :  { %p424_p0 = scmp.ne.s32.totalorder %s699_s1, %s423_s24  ;;  %p427_p1 = scmp.lt.u32.totalorder %s423_s24, %s699_s1 }
   0x7   :  { %p429_p2 = pnand %p427_p1, %p424_p0 }
   0x9   :  { %432 = shalt.err (!%p429_p2)
}
   0xa   :  { %s433_s29 = scalar_lea.vmem %s31_s19, 512  ;;  %p438_p4 = scmp.lt.s32.totalorder %s31_s19, %s31_s19 }
   0xb   :  { %p434_p3 = scmp.ne.s32.totalorder %s31_s19, %s433_s29  ;;  %p439_p5 = scmp.lt.s32.totalorder %s433_s29, %s433_s29 }
   0xd   :  { %p440_p6 = por %p439_p5, %p438_p4 }
   0xf   :  { %p441_p7 = pnand %p440_p6, %p434_p3 }
  0x11   :  { %444 = shalt.err (!%p441_p7)
}
  0x12   :  { %s519_s30 = smov 128   ;;  %s520_s6 = smov 8  }
  0x13   :  { %36 = dma.hbm_to_vmem [thread:$0]  %s699_s1, 512, %s31_s19, [#allocation12], %s519_s30, %s519_s30, %s520_s6  }
  0x14   :  { %s445_s11 = scalar_lea.hbm %s698_s0, 512 }
  0x15   :  { %p446_p8 = scmp.ne.s32.totalorder %s698_s0, %s445_s11  ;;  %p449_p9 = scmp.lt.u32.totalorder %s445_s11, %s698_s0 }
  0x17   :  { %p451_p10 = pnand %p449_p9, %p446_p8 }
  0x19   :  { %454 = shalt.err (!%p451_p10)
}
  0x1a   :  { %s455_s16 = scalar_lea.vmem %s555_s21, 512  ;;  %p460_p12 = scmp.lt.s32.totalorder %s555_s21, %s555_s21 }
  0x1b   :  { %p456_p11 = scmp.ne.s32.totalorder %s555_s21, %s455_s16  ;;  %p461_p13 = scmp.lt.s32.totalorder %s455_s16, %s455_s16 }
  0x1d   :  { %p462_p0 = por %p461_p13, %p460_p12 }
  0x1f   :  { %p463_p1 = pnand %p462_p0, %p456_p11 }
  0x21   :  { %466 = shalt.err (!%p463_p1)
}
  0x22   :  { %24 = dma.hbm_to_vmem [thread:$0]  %s698_s0, 512, %s555_s21, [#allocation9], %s519_s30, %s519_s30, %s520_s6  }
  0x23   :  { %s521_s18 = smov [#allocation13]   ;;  %s467_s23 = scalar_lea.hbm %s700_s2, 2048 }
  0x24   :  { %s42_s19 = sshll.u32 %s521_s18, 4  ;;  %p468_p2 = scmp.ne.s32.totalorder %s700_s2, %s467_s23  ;;  %s43_s19 = int_to_ptr.vmem [resolvable:$true] %s42_s19 }
  0x25   :  { %p471_p3 = scmp.lt.u32.totalorder %s467_s23, %s700_s2 }
  0x27   :  { %p473_p4 = pnand %p471_p3, %p468_p2 }
  0x29   :  { %476 = shalt.err (!%p473_p4)
}
  0x2a   :  { %s477_s28 = scalar_lea.vmem %s43_s19, 2048  ;;  %p482_p6 = scmp.lt.s32.totalorder %s43_s19, %s43_s19 }
  0x2b   :  { %p478_p5 = scmp.ne.s32.totalorder %s43_s19, %s477_s28  ;;  %p483_p7 = scmp.lt.s32.totalorder %s477_s28, %s477_s28 }
  0x2d   :  { %p484_p8 = por %p483_p7, %p482_p6 }
  0x2f   :  { %p485_p9 = pnand %p484_p8, %p478_p5 }
  0x31   :  { %488 = shalt.err (!%p485_p9)
}
  0x32   :  { %48 = dma.hbm_to_vmem [thread:$0]  %s700_s2, 2048, %s43_s19, [#allocation12], %s519_s30, %s519_s30, %s520_s6  }
  0x33   :  { %511 = dma.done.wait [#allocation9], 512  }
  0x34   :  { %512 = vsyncadd [#allocation9], 4294966784 }
  0x35   :  { %513 = dma.done.wait [#allocation12], 2560  }
  0x36   :  { %514 = vsyncadd [#allocation12], 4294964736  ;;  %v522_v0 = vmov 0.0   ;;  %v607_v1 = vld [vmem:[#allocation8] sm:$0xff]  ;;  %v609_v2 = vld [vmem:[#allocation8 + $0x8] sm:$0xff]  ;;  %vm295_vm0 = vcmask 1040384  }
  0x37   :  { %66 = vst [vmem:[#allocation2] sm:$0x1] %v522_v0  ;;  %67 = vst [vmem:[#allocation3] sm:$0x1] %v522_v0  ;;  %v611_v3 = vld [vmem:[#allocation8 + $0x10] sm:$0xff]  ;;  %v613_v4 = vld [vmem:[#allocation8 + $0x18] sm:$0xff] }
  0x38   :  { %68 = vst [vmem:[#allocation4] sm:$0x1] %v522_v0  ;;  %69 = vst [vmem:[#allocation5] sm:$0x1] %v522_v0  ;;  %v615_v5 = vld [vmem:[#allocation11] sm:$0xff]  ;;  %v617_v6 = vld [vmem:[#allocation11 + $0x8] sm:$0xff] }
  0x39   :  { %70 = vst [vmem:[#allocation6] sm:$0x1] %v522_v0  ;;  %71 = vst [vmem:[#allocation7] sm:$0x1] %v522_v0  ;;  %v619_v7 = vld [vmem:[#allocation11 + $0x10] sm:$0xff]  ;;  %v621_v8 = vld [vmem:[#allocation11 + $0x18] sm:$0xff]  ;;  %v83_v9 = vmul.f32 %v615_v5, %v607_v1  ;;  %v84_v10 = vmul.f32 %v617_v6, %v609_v2 }
  0x3a   :  { %v85_v11 = vmul.f32 %v619_v7, %v611_v3  ;;  %v96_v12 = vld [vmem:[%s701_s3] sm:$0x1]  ;;  %v86_v14 = vmul.f32 %v621_v8, %v613_v4  ;;  %v111_v19 = vld [vmem:[#allocation13] sm:$0xff]  ;;  %v112_v20 = vld [vmem:[#allocation13 + $0x8] sm:$0xff]  ;;  %s524_s1 = smov [#allocation14]  }
  0x3b   :  { %v87_v15 = vadd.f32 %v84_v10, %v83_v9  ;;  %v108_v17 = vmul.f32 %v96_v12, %v96_v12  ;;  %v113_v21 = vld [vmem:[#allocation13 + $0x10] sm:$0xff]  ;;  %v114_v22 = vld [vmem:[#allocation13 + $0x18] sm:$0xff]  ;;  %v116_v23 = vmul.f32 %v111_v19, %v607_v1  ;;  %v117_v24 = vmul.f32 %v112_v20, %v609_v2  ;;  %v149_v31 = vld [vmem:[#allocation13 + $0x20] sm:$0xff]  ;;  %s390_s17 = sshll.u32 %s524_s1, 4  ;;  %s391_s17 = int_to_ptr.vmem [resolvable:$true] %s390_s17 }
  0x3c   :  { %v130_v25 = vmul.f32 %v111_v19, %v615_v5  ;;  %v131_v26 = vmul.f32 %v112_v20, %v617_v6  ;;  %v118_v29 = vmul.f32 %v113_v21, %v611_v3  ;;  %v119_v30 = vmul.f32 %v114_v22, %v613_v4  ;;  %v150_v32 = vld [vmem:[#allocation13 + $0x28] sm:$0xff]  ;;  %v151_v33 = vld [vmem:[#allocation13 + $0x30] sm:$0xff]  ;;  %v152_v38 = vld [vmem:[#allocation13 + $0x38] sm:$0xff]  ;;  %s489_s18 = scalar_lea.vmem %s391_s17, 128  ;;  %p494_p11 = scmp.lt.s32.totalorder %s391_s17, %s391_s17 }
  0x3d   :  { %v88_v27 = vadd.f32 %v87_v15, %v85_v11  ;;  %v120_v34 = vadd.f32 %v117_v24, %v116_v23  ;;  %v132_v35 = vmul.f32 %v113_v21, %v619_v7  ;;  %v133_v36 = vmul.f32 %v114_v22, %v621_v8  ;;  %v188_v43 = vld [vmem:[#allocation13 + $0x40] sm:$0xff]  ;;  %v189_v48 = vld [vmem:[#allocation13 + $0x48] sm:$0xff]  ;;  %v190_v53 = vld [vmem:[#allocation13 + $0x50] sm:$0xff]  ;;  %p490_p10 = scmp.ne.s32.totalorder %s391_s17, %s489_s18  ;;  %p495_p12 = scmp.lt.s32.totalorder %s489_s18, %s489_s18 }
  0x3e   :  { %v134_v37 = vadd.f32 %v131_v26, %v130_v25  ;;  %v155_v40 = vmul.f32 %v149_v31, %v607_v1  ;;  %v156_v41 = vmul.f32 %v150_v32, %v609_v2  ;;  %v157_v42 = vmul.f32 %v151_v33, %v611_v3  ;;  %v191_v54 = vld [vmem:[#allocation13 + $0x58] sm:$0xff] }
  0x3f   :  { %v104_v13 = vld [vmem:[#allocation4] sm:$0x1]  ;;  %v107_v18 = vld [vmem:[#allocation5] sm:$0x1]  ;;  %v89_v39 = vadd.f32 %v88_v27, %v86_v14  ;;  %v121_v44 = vadd.f32 %v120_v34, %v118_v29  ;;  %v158_v46 = vmul.f32 %v152_v38, %v613_v4  ;;  %v169_v47 = vmul.f32 %v149_v31, %v615_v5  ;;  %v97_v31 = vld [vmem:[#allocation2] sm:$0x1]  ;;  %p496_p13 = por %p495_p12, %p494_p11 }
  0x40   :  { %v105_v16 = vadd.f32 %v104_v13, %v96_v12  ;;  %v109_v28 = vadd.f32 %v108_v17, %v107_v18  ;;  %v135_v45 = vadd.f32 %v134_v37, %v132_v35  ;;  %v159_v50 = vadd.f32 %v156_v41, %v155_v40  ;;  %v100_v40 = vld [vmem:[#allocation3] sm:$0x1] }
  0x41   :  { %v90_v49 = vrot.slane %v89_v39, 4  ;;  %v170_v51 = vmul.f32 %v150_v32, %v617_v6  ;;  %v171_v52 = vmul.f32 %v151_v33, %v619_v7  ;;  %v122_v55 = vadd.f32 %v121_v44, %v119_v30  ;;  %v228_v44 = vld [vmem:[#allocation13 + $0x68] sm:$0xff]  ;;  %p497_p0 = pnand %p496_p13, %p490_p10 }
  0x42   :  { %106 = vst [vmem:[#allocation4] sm:$0x1] %v105_v16  ;;  %110 = vst [vmem:[#allocation5] sm:$0x1] %v109_v28  ;;  %v136_v56 = vadd.f32 %v135_v45, %v133_v36  ;;  %v172_v57 = vmul.f32 %v152_v38, %v621_v8  ;;  %v194_v58 = vmul.f32 %v188_v43, %v607_v1 }
  0x43   :  { %v91_v59 = vadd.f32 %v90_v49, %v89_v39  ;;  %v160_v60 = vadd.f32 %v159_v50, %v157_v42  ;;  %v173_v61 = vadd.f32 %v170_v51, %v169_v47  ;;  %v195_v62 = vmul.f32 %v189_v48, %v609_v2 }
  0x44   :  { %v123_v0 = vrot.slane %v122_v55, 4  ;;  %v137_v9 = vrot.slane %v136_v56, 4  ;;  %v196_v10 = vmul.f32 %v190_v53, %v611_v3  ;;  %v197_v11 = vmul.f32 %v191_v54, %v613_v4 }
  0x45   :  { %v92_v12 = vrot.slane %v91_v59, 2  ;;  %v161_v14 = vadd.f32 %v160_v60, %v158_v46  ;;  %v174_v15 = vadd.f32 %v173_v61, %v171_v52  ;;  %v198_v19 = vadd.f32 %v195_v62, %v194_v58  ;;  %v229_v52 = vld [vmem:[#allocation13 + $0x70] sm:$0xff]  ;;  %v230_v60 = vld [vmem:[#allocation13 + $0x78] sm:$0xff] }
  0x46   :  { %v124_v17 = vadd.f32 %v123_v0, %v122_v55  ;;  %v138_v18 = vadd.f32 %v137_v9, %v136_v56  ;;  %v208_v20 = vmul.f32 %v188_v43, %v615_v5  ;;  %v209_v27 = vmul.f32 %v189_v48, %v617_v6  ;;  %v227_v43 = vld [vmem:[#allocation13 + $0x60] sm:$0xff] }
  0x47   :  { %v93_v21 = vadd.f32 %v92_v12, %v91_v59  ;;  %v162_v23 = vrot.slane %v161_v14, 4  ;;  %v175_v24 = vadd.f32 %v174_v15, %v172_v57  ;;  %v199_v26 = vadd.f32 %v198_v19, %v196_v10 }
  0x48   :  { %v125_v25 = vrot.slane %v124_v17, 2  ;;  %v139_v33 = vrot.slane %v138_v18, 2  ;;  %v210_v35 = vmul.f32 %v190_v53, %v619_v7  ;;  %v212_v39 = vadd.f32 %v209_v27, %v208_v20 }
  0x49   :  { %v324_v63 = vld [vmem:[#allocation4] sm:$0x1]  ;;  %v339_v16 = vld [vmem:[#allocation5] sm:$0x1]  ;;  %v94_v28 = vrot.slane %v93_v21, 1  ;;  %v163_v29 = vadd.f32 %v162_v23, %v161_v14  ;;  %v176_v30 = vrot.slane %v175_v24, 4  ;;  %v200_v34 = vadd.f32 %v199_v26, %v197_v11 }
  0x4a   :  { %v325_v13 = vsel %vm295_vm0, %v324_v63, 0.0  ;;  %v340_v22 = vsel %vm295_vm0, %v339_v16, 0.0  ;;  %v126_v32 = vadd.f32 %v125_v25, %v124_v17  ;;  %v211_v42 = vmul.f32 %v191_v54, %v621_v8  ;;  %v115_v16 = vld [vmem:[%s702_s4] sm:$0x3] }
  0x4b   :  { %326 = vadd.xlane.f32.xlu1 %v325_v13  ;;  %v95_v36 = vadd.f32 %v94_v28, %v93_v21  ;;  %v164_v37 = vrot.slane %v163_v29, 2  ;;  %v177_v38 = vadd.f32 %v176_v30, %v175_v24  ;;  %v201_v41 = vrot.slane %v200_v34, 4 }
  0x4c   :  { %v140_v49 = vadd.f32 %v139_v33, %v138_v18  ;;  %v213_v51 = vadd.f32 %v212_v39, %v210_v35  ;;  %v127_v55 = vrot.slane %v126_v32, 1  ;;  %v233_v56 = vmul.f32 %v227_v43, %v607_v1 }
  0x4d   :  { %v98_v45 = vadd.f32 %v97_v31, %v95_v36  ;;  %v101_v46 = vmul.f32 %v95_v36, %v95_v36  ;;  %v165_v47 = vadd.f32 %v164_v37, %v163_v29  ;;  %v178_v48 = vrot.slane %v177_v38, 2 }
  0x4e   :  { %v202_v50 = vadd.f32 %v201_v41, %v200_v34  ;;  %v234_v57 = vmul.f32 %v228_v44, %v609_v2  ;;  %v214_v54 = vadd.f32 %v213_v51, %v211_v42  ;;  %v235_v62 = vmul.f32 %v229_v52, %v611_v3 }
  0x4f   :  { %341 = vadd.xlane.f32.xlu1 %v340_v22  ;;  %99 = vst [vmem:[#allocation2] sm:$0x1] %v98_v45  ;;  %v102_v53 = vadd.f32 %v101_v46, %v100_v40  ;;  %v179_v58 = vadd.f32 %v178_v48, %v177_v38  ;;  %v166_v61 = vrot.slane %v165_v47, 1  ;;  %v141_v63 = vrot.slane %v140_v49, 1 }
  0x50   :  { %v203_v59 = vrot.slane %v202_v50, 2  ;;  %v215_v9 = vrot.slane %v214_v54, 4  ;;  %v128_v10 = vadd.f32 %v127_v55, %v126_v32  ;;  %v236_v11 = vmul.f32 %v230_v60, %v613_v4  ;;  %v400_v4 = vld [vmem:[%s702_s4 + $0x2] sm:$0x3] }
  0x51   :  { %103 = vst [vmem:[#allocation3] sm:$0x1] %v102_v53  ;;  %v237_v12 = vadd.f32 %v234_v57, %v233_v56  ;;  %v247_v13 = vmul.f32 %v227_v43, %v615_v5  ;;  %v180_v1 = vrot.slane %v179_v58, 1  ;;  %v248_v2 = vmul.f32 %v228_v44, %v617_v6 }
  0x52   :  { %v204_v0 = vadd.f32 %v203_v59, %v202_v50  ;;  %v216_v14 = vadd.f32 %v215_v9, %v214_v54  ;;  %v249_v15 = vmul.f32 %v229_v52, %v619_v7  ;;  %v167_v3 = vadd.f32 %v166_v61, %v165_v47  ;;  %v402_v52 = vld [vmem:[%s702_s4 + $0x6] sm:$0x3] }
  0x53   :  { %v238_v18 = vadd.f32 %v237_v12, %v235_v62  ;;  %v250_v5 = vmul.f32 %v230_v60, %v621_v8  ;;  %v251_v21 = vadd.f32 %v248_v2, %v247_v13  ;;  %v142_v22 = vadd.f32 %v141_v63, %v140_v49  ;;  %v401_v8 = vld [vmem:[%s702_s4 + $0x4] sm:$0x3] }
  0x54   :  { %v205_v17 = vrot.slane %v204_v0, 1  ;;  %v217_v20 = vrot.slane %v216_v14, 2  ;;  %v129_v24 = vsub.f32 %v128_v10, %v115_v16  ;;  %v181_v25 = vadd.f32 %v180_v1, %v179_v58  ;;  %v265_v12 = vld [vmem:[#allocation6] sm:$0x1] }
  0x55   :  { %v239_v7 = vadd.f32 %v238_v18, %v236_v11  ;;  %v252_v27 = vadd.f32 %v251_v21, %v249_v15  ;;  %v168_v29 = vsub.f32 %v167_v3, %v400_v4  ;;  %v143_v35 = vsub.f32 %v142_v22, %v115_v16  ;;  %v268_v18 = vld [vmem:[#allocation7] sm:$0x1] }
  0x56   :  { %v294_v19 = vld [vmem:[#allocation2] sm:$0x1]  ;;  %v218_v26 = vadd.f32 %v217_v20, %v216_v14  ;;  %v206_v30 = vadd.f32 %v205_v17, %v204_v0  ;;  %v182_v36 = vsub.f32 %v181_v25, %v400_v4  ;;  %v144_v39 = vmul.f32 %v129_v24, %v129_v24 }
  0x57   :  { %v296_v6 = vsel %vm295_vm0, %v294_v19, 0.0  ;;  %v240_v31 = vrot.slane %v239_v7, 4  ;;  %v253_v33 = vadd.f32 %v252_v27, %v250_v5  ;;  %v183_v40 = vmul.f32 %v168_v29, %v168_v29 }
  0x58   :  { %297 = vadd.xlane.f32.xlu0 %v296_v6  ;;  %v309_v23 = vld [vmem:[#allocation3] sm:$0x1]  ;;  %v219_v32 = vrot.slane %v218_v26, 1  ;;  %v207_v41 = vsub.f32 %v206_v30, %v401_v8  ;;  %v146_v45 = vmul.f32 %v143_v35, %v143_v35  ;;  %v185_v46 = vmul.f32 %v182_v36, %v182_v36 }
  0x59   :  { %v310_v28 = vsel %vm295_vm0, %v309_v23, 0.0  ;;  %v241_v34 = vadd.f32 %v240_v31, %v239_v7  ;;  %v254_v38 = vrot.slane %v253_v33, 4  ;;  %v184_v49 = vadd.f32 %v183_v40, %v144_v39 }
  0x5a   :  { %v220_v37 = vadd.f32 %v219_v32, %v218_v26  ;;  %v222_v50 = vmul.f32 %v207_v41, %v207_v41  ;;  %v523_v55 = vmov 1966171168   ;;  %v273_v57 = vlaneseq }
  0x5b   :  { %v242_v42 = vrot.slane %v241_v34, 2  ;;  %v255_v43 = vadd.f32 %v254_v38, %v253_v33  ;;  %v271_v56 = vunpack.c.l.s4 %v523_v55  ;;  %v186_v60 = vadd.f32 %v185_v46, %v146_v45 }
  0x5c   :  { %311 = vadd.xlane.f32.xlu0 %v310_v28  ;;  %v221_v47 = vsub.f32 %v220_v37, %v401_v8  ;;  %v223_v61 = vadd.f32 %v222_v50, %v184_v49  ;;  %v274_v9 = vshrl.u32 %v273_v57, 7 }
  0x5d   :  { %v243_v44 = vadd.f32 %v242_v42, %v241_v34  ;;  %v256_v48 = vrot.slane %v255_v43, 2  ;;  %v272_v0 = vunpack.c.0.s8 %v271_v56 }
  0x5e   :  { %v224_v59 = vmul.f32 %v221_v47, %v221_v47 }
  0x5f   :  { %v244_v51 = vrot.slane %v243_v44, 1  ;;  %v257_v53 = vadd.f32 %v256_v48, %v255_v43  ;;  %v275_v2 = vsub.s32 %v272_v0, %v274_v9 }
  0x60   :  { %v225_v13 = vadd.f32 %v224_v59, %v186_v60 }
  0x61   :  { %v245_v58 = vadd.f32 %v244_v51, %v243_v44  ;;  %v258_v54 = vrot.slane %v257_v53, 1 }
  0x63   :  { %v246_v62 = vsub.f32 %v245_v58, %v402_v52  ;;  %v259_v63 = vadd.f32 %v258_v54, %v257_v53 }
  0x65   :  { %v261_v10 = vmul.f32 %v246_v62, %v246_v62  ;;  %v260_v11 = vsub.f32 %v259_v63, %v402_v52  ;;  %v292_v63 = vand.u32 127, %v273_v57 }
  0x67   :  { %v262_v1 = vadd.f32 %v261_v10, %v223_v61  ;;  %v263_v14 = vmul.f32 %v260_v11, %v260_v11  ;;  %vm308_vm1 = vcmp.eq.s32.totalorder %v292_v63, 1  ;;  %vm293_vm2 = vcmp.eq.s32.totalorder %v292_v63, 0 }
  0x68   :  { %vm323_vm3 = vcmp.eq.s32.totalorder %v292_v63, 2  ;;  %vm338_vm4 = vcmp.eq.s32.totalorder %v292_v63, 3  ;;  %vm353_vm5 = vcmp.eq.s32.totalorder %v292_v63, 4  ;;  %vm368_vm6 = vcmp.eq.s32.totalorder %v292_v63, 5 }
  0x69   :  { %v266_v15 = vadd.f32 %v265_v12, %v262_v1  ;;  %v264_v16 = vadd.f32 %v263_v14, %v225_v13 }
  0x6b   :  { %267 = vst [vmem:[#allocation6] sm:$0x1] %v266_v15  ;;  %v276_v3 = vrot.slane %v264_v16, %v275_v2 }
  0x6d   :  { %v277_v17 = vcombine.high %v276_v3, %v276_v3 }
  0x6f   :  { %v284_v19 = vrot.slane %v277_v17, %v275_v2 }
  0x71   :  { %v286_v20 = vadd.f32 %v284_v19, %v268_v18 }
  0x72   :  { %v354_v4 = vld [vmem:[#allocation6] sm:$0x1] }
  0x73   :  { %v355_v5 = vsel %vm295_vm0, %v354_v4, 0.0  ;;  %287 = vst [vmem:[#allocation7] sm:$0x1] %v286_v20 }
  0x74   :  { %356 = vadd.xlane.f32.xlu0 %v355_v5 }
  0x7a   :  { %v369_v21 = vld [vmem:[#allocation7] sm:$0x1] }
  0x7b   :  { %v370_v6 = vsel %vm295_vm0, %v369_v21, 0.0 }
  0x7c   :  { %371 = vadd.xlane.f32.xlu1 %v370_v6 }
  0xd8   :  { %v327_v22 = vpop.xlane.xlu1 %326 }
  0xd9   :  { %v328_v24 = vrot.slane %v327_v22, 4 }
  0xdb   :  { %v329_v27 = vadd.f32 %v328_v24, %v327_v22 }
  0xdc   :  { %v342_v7 = vpop.xlane.xlu1 %341 }
  0xdd   :  { %v343_v23 = vrot.slane %v342_v7, 4  ;;  %v330_v31 = vrot.slane %v329_v27, 2 }
  0xdf   :  { %v344_v25 = vadd.f32 %v343_v23, %v342_v7  ;;  %v331_v37 = vadd.f32 %v330_v31, %v329_v27 }
  0xe1   :  { %v345_v30 = vrot.slane %v344_v25, 2  ;;  %v332_v43 = vrot.slane %v331_v37, 1 }
  0xe3   :  { %v346_v36 = vadd.f32 %v345_v30, %v344_v25  ;;  %v333_v47 = vadd.f32 %v332_v43, %v331_v37 }
  0xe5   :  { %v298_v26 = vpop.xlane.xlu0 %297  ;;  %v347_v42 = vrot.slane %v346_v36, 1 }
  0xe6   :  { %v299_v28 = vrot.slane %v298_v26, 4 }
  0xe7   :  { %v348_v46 = vadd.f32 %v347_v42, %v346_v36 }
  0xe8   :  { %v300_v29 = vadd.f32 %v299_v28, %v298_v26 }
  0xe9   :  { %v312_v8 = vpop.xlane.xlu0 %311 }
  0xea   :  { %v301_v32 = vrot.slane %v300_v29, 2  ;;  %v313_v33 = vrot.slane %v312_v8, 4 }
  0xec   :  { %v314_v34 = vadd.f32 %v313_v33, %v312_v8  ;;  %v302_v35 = vadd.f32 %v301_v32, %v300_v29 }
  0xee   :  { %v315_v38 = vrot.slane %v314_v34, 2  ;;  %v303_v39 = vrot.slane %v302_v35, 1 }
  0xf0   :  { %v304_v40 = vadd.f32 %v303_v39, %v302_v35  ;;  %v316_v41 = vadd.f32 %v315_v38, %v314_v34 }
  0xf2   :  { %403 = vpush %v304_v40  ;;  %v317_v44 = vrot.slane %v316_v41, 1 }
  0xf4   :  { %v318_v45 = vadd.f32 %v317_v44, %v316_v41 }
  0xf6   :  { %405 = vpush %v318_v45 }
  0xf7   :  { %407 = vpush %v333_v47 }
  0xf8   :  { %409 = vpush %v348_v46 }
 0x101   :  { %v357_v48 = vpop.xlane.xlu0 %356 }
 0x102   :  { %v358_v49 = vrot.slane %v357_v48, 4 }
 0x104   :  { %v359_v50 = vadd.f32 %v358_v49, %v357_v48 }
 0x106   :  { %v360_v51 = vrot.slane %v359_v50, 2 }
 0x108   :  { %v361_v52 = vadd.f32 %v360_v51, %v359_v50 }
 0x109   :  { %v372_v53 = vpop.xlane.xlu1 %371 }
 0x10a   :  { %v362_v55 = vrot.slane %v361_v52, 1  ;;  %v373_v56 = vrot.slane %v372_v53, 4 }
 0x10c   :  { %v363_v58 = vadd.f32 %v362_v55, %v361_v52  ;;  %v374_v59 = vadd.f32 %v373_v56, %v372_v53 }
 0x10e   :  { %411 = vpush %v363_v58  ;;  %v375_v54 = vrot.slane %v374_v59, 2 }
 0x110   :  { %v376_v60 = vadd.f32 %v375_v54, %v374_v59 }
 0x112   :  { %v377_v61 = vrot.slane %v376_v60, 1 }
 0x114   :  { %v378_v62 = vadd.f32 %v377_v61, %v376_v60 }
 0x116   :  { %413 = vpush %v378_v62 }
 0x123   :  { %s404_s4 = spop %403 }
 0x124   :  { %v306_v9 = vstv %s404_s4 }
 0x125   :  { %v307_v11 = vsel %vm293_vm2, %v306_v9, 0.0 }
 0x127   :  { %s406_s12 = spop %405 }
 0x128   :  { %v320_v0 = vstv %s406_s12  ;;  %s408_s13 = spop %407 }
 0x129   :  { %v321_v10 = vsel %vm308_vm1, %v320_v0, 0.0  ;;  %v335_v13 = vstv %s408_s13  ;;  %s410_s14 = spop %409 }
 0x12a   :  { %v322_v12 = vadd.f32 %v321_v10, %v307_v11  ;;  %v336_v1 = vsel %vm323_vm3, %v335_v13, 0.0  ;;  %v350_v2 = vstv %s410_s14 }
 0x12b   :  { %v351_v16 = vsel %vm338_vm4, %v350_v2, 0.0 }
 0x12c   :  { %v337_v14 = vadd.f32 %v336_v1, %v322_v12 }
 0x12e   :  { %v352_v57 = vadd.f32 %v351_v16, %v337_v14 }
 0x13f   :  { %s412_s15 = spop %411 }
 0x140   :  { %v365_v15 = vstv %s412_s15 }
 0x141   :  { %v366_v3 = vsel %vm353_vm5, %v365_v15, 0.0 }
 0x142   :  { %v367_v17 = vadd.f32 %v366_v3, %v352_v57 }
 0x147   :  { %s414_s16 = spop %413 }
 0x148   :  { %v380_v18 = vstv %s414_s16 }
 0x149   :  { %v381_v19 = vsel %vm368_vm6, %v380_v18, 0.0 }
 0x14a   :  { %v382_v4 = vadd.f32 %v381_v19, %v367_v17 }
 0x14c   :  { %383 = vst [vmem:[#allocation14] sm:$0xff] %v382_v4 }
 0x14d   :  { %500 = shalt.err (!%p497_p0)
}
 0x14e   :  { %s501_s22 = scalar_lea.hbm %s703_s5, 128 }
 0x14f   :  { %p502_p1 = scmp.ne.s32.totalorder %s703_s5, %s501_s22  ;;  %p505_p2 = scmp.lt.u32.totalorder %s501_s22, %s703_s5 }
 0x151   :  { %p507_p3 = pnand %p505_p2, %p502_p1 }
 0x153   :  { %510 = shalt.err (!%p507_p3)
}
 0x154   :  { %393 = dma.vmem_to_hbm [thread:$0]  %s391_s17, 128, %s703_s5, [#allocation10]  }
 0x155   :  { %515 = dma.done.wait [#allocation10], 128  }
 0x156   :  { %516 = vsyncadd [#allocation10], 4294967168 }
 0x157   :  { %397 = vsyncpa [#allocation9], 1 }
 0x158   :  { %398 = vsyncpa [#allocation12], 1 }
 0x159   :  { %399 = vsyncpa [#allocation10], 1 }

</bundles_post_ra>
